<compile_context>
chip_gen: v7x
topology: tpu7x:2x2x1
jax: 0.10.0
libtpu: 0.0.40
codegen_flags: <defaults>
</compile_context>

<pallas_src>
import functools

import jax
import jax.numpy as jnp
from jax import lax
from jax.experimental import pallas as pl
from jax.experimental.pallas import tpu as pltpu

EPS = 1e-5
NUM_LBR = 6    # six LBR blocks, then one plain Linear (fc7)
LANES = 128    # pad feature dim to full lane width


def hidden_nn_kernel(x_ref, w_ref, vec_ref, o_ref, *, in_dim):
    """x_ref: (N, in_dim) f32, unpadded (padding handled by zero weight rows).
    w_ref:   (7, F, F) bf16 weight stack, stored (in_features, out_features),
             zero-padded to F lanes.
    vec_ref: (13, F) f32 — rows 0..5 gammas, 6..11 betas, 12 = fc7 bias.
    o_ref:   (N, F) f32 — padded output columns are exactly 0."""
    h = x_ref[...].astype(jnp.bfloat16)                  # (N, in_dim) bf16
    for i in range(NUM_LBR):
        w = w_ref[i]                                     # (F, F) bf16
        if i == 0:
            # First layer consumes the unpadded input: a static K-slice of the
            # zero-padded weight equals padding x with zeros (exact).
            w = w[:in_dim, :]
        # Linear; bias dropped — exactly cancelled by the BN mean subtraction.
        y = jnp.dot(h, w, preferred_element_type=jnp.float32)   # (N, F) f32
        # BatchNorm1d with per-batch (biased) statistics; affine folded into a
        # single scale/shift on the centered value.
        mean = jnp.mean(y, axis=0, keepdims=True)
        c = y - mean
        var = jnp.mean(c * c, axis=0, keepdims=True)
        scale = vec_ref[i:i + 1, :] * lax.rsqrt(var + EPS)       # gamma folded (EUP rsqrt)
        beta = vec_ref[NUM_LBR + i:NUM_LBR + i + 1, :]
        # ReLU (dropout = identity in eval); bf16 cast fused into the write so
        # the loop-carried activation feeds the next matmul directly.
        # Padded columns: c == 0 and beta_pad == 0  =>  h stays exactly 0.
        h = jnp.maximum(c * scale + beta, 0.0).astype(jnp.bfloat16)
    # fc7: plain Linear, bias kept.
    y = jnp.dot(h, w_ref[NUM_LBR], preferred_element_type=jnp.float32)
    o_ref[...] = (y + vec_ref[12:13, :]).astype(o_ref.dtype)


def init_params(key, in_dim, out_dim):
    """PyTorch-style init. Returns 7 layer tuples:
    layers[0..5] = (W(in,out), b, gamma, beta), layers[6] = (W, b).
    Weights are stored transposed vs PyTorch, i.e. (in_features, out_features)."""
    dims = [(in_dim, in_dim), (in_dim, in_dim), (in_dim, out_dim),
            (out_dim, out_dim), (out_dim, out_dim), (out_dim, out_dim),
            (out_dim, out_dim)]
    layers = []
    for i, (fi, fo) in enumerate(dims):
        key, kw, kb = jax.random.split(key, 3)
        bound = 1.0 / jnp.sqrt(jnp.float32(fi))
        w = jax.random.uniform(kw, (fi, fo), jnp.float32, -bound, bound)
        b = jax.random.uniform(kb, (fo,), jnp.float32, -bound, bound)
        if i < NUM_LBR:
            gamma = jnp.ones((fo,), jnp.float32)
            beta = jnp.zeros((fo,), jnp.float32)
            layers.append((w, b, gamma, beta))
        else:
            layers.append((w, b))
    return layers


def pack_params(layers, in_dim, out_dim):
    """Consolidate all parameters into two lane-dense arrays:
      w_stack: (7, F, F) bf16  — zero-padded weight stack
      vec:     (13, F) f32     — gammas(6) / betas(6) / fc7 bias
    F is the feature dim rounded up to a multiple of 128 lanes.  Padded
    columns are exact zeros through BN+ReLU because beta_pad == 0 (and
    gamma_pad == 0, bias_pad == 0)."""
    F = max(in_dim, out_dim)
    F = ((F + LANES - 1) // LANES) * LANES
    w_stack = jnp.zeros((7, F, F), jnp.float32)
    vec = jnp.zeros((13, F), jnp.float32)
    for i, layer in enumerate(layers):
        w = layer[0]
        fi, fo = w.shape
        w_stack = w_stack.at[i, :fi, :fo].set(w)
        if i < NUM_LBR:
            _, _b, gamma, beta = layer       # Linear bias intentionally dropped
            vec = vec.at[i, :fo].set(gamma)
            vec = vec.at[NUM_LBR + i, :fo].set(beta)
        else:
            _, b7 = layer
            vec = vec.at[12, :fo].set(b7)
    # Fragile-coupling guard: padded beta / gamma / bias columns must be 0 so
    # padded output columns stay exactly 0.
    assert bool(jnp.all(vec[:, max(in_dim, out_dim):] == 0.0))
    return w_stack.astype(jnp.bfloat16), vec


@functools.partial(jax.jit, static_argnames=("out_dim",))
def hidden_nn_forward(x, w_stack, vec, out_dim):
    n, in_dim = x.shape
    F = w_stack.shape[-1]
    kernel = functools.partial(hidden_nn_kernel, in_dim=in_dim)

    cost = pl.CostEstimate(
        flops=int(2 * n * (in_dim * F + 6 * F * F)),
        transcendentals=int(NUM_LBR * F),                 # rsqrt per BN feature
        bytes_accessed=int(4 * n * in_dim + 2 * 7 * F * F + 4 * 13 * F
                           + 4 * n * F),
    )
    vmem = pl.BlockSpec(memory_space=pltpu.MemorySpace.VMEM)
    out = pl.pallas_call(
        kernel,
        out_shape=jax.ShapeDtypeStruct((n, F), jnp.float32),
        in_specs=[vmem, vmem, vmem],
        out_specs=vmem,
        cost_estimate=cost,
    )(x.astype(jnp.float32), w_stack, vec)
    return out[:, :out_dim]


def reference_forward(x, layers):
    """Pure-JAX reference mirroring the PyTorch math (Linear biases included,
    bf16 matmul inputs with f32 accumulation to match the kernel's dtype)."""
    h = x.astype(jnp.float32)
    for (w, b, gamma, beta) in layers[:NUM_LBR]:
        y = jnp.dot(h.astype(jnp.bfloat16), w.astype(jnp.bfloat16),
                    preferred_element_type=jnp.float32) + b
        mean = jnp.mean(y, axis=0, keepdims=True)
        var = jnp.mean((y - mean) ** 2, axis=0, keepdims=True)
        h = jnp.maximum(gamma * (y - mean) * lax.rsqrt(var + EPS) + beta, 0.0)
    w7, b7 = layers[NUM_LBR]
    return jnp.dot(h.astype(jnp.bfloat16), w7.astype(jnp.bfloat16),
                   preferred_element_type=jnp.float32) + b7


if __name__ == "__main__":
    batch, in_dim, out_dim = 8, 32, 64

    key = jax.random.PRNGKey(0)
    key, kx = jax.random.split(key)
    x = jax.random.normal(kx, (batch, in_dim), jnp.float32)
    layers = init_params(key, in_dim, out_dim)
    w_stack, vec = pack_params(layers, in_dim, out_dim)

    out = hidden_nn_forward(x, w_stack, vec, out_dim)
    out = jax.block_until_ready(out)

    ref = reference_forward(x, layers)
    assert out.shape == (batch, out_dim)
    # bf16 matmul inputs in both paths; remaining diffs are f32-rounding level
    # (reference adds Linear bias before BN, kernel cancels it analytically).
    assert jnp.allclose(out, ref, atol=1e-2, rtol=1e-2), "mismatch vs reference"

    print("KERNEL_OK")
</pallas_src>

<mosaic_0001>
module attributes {stable_mosaic.version = 11 : i64} {
  func.func @hidden_nn_kernel(%arg0: memref<8x32xf32, #tpu.memory_space<vmem>>, %arg1: memref<7x128x128xbf16, #tpu.memory_space<vmem>>, %arg2: memref<13x128xf32, #tpu.memory_space<vmem>>, %arg3: memref<8x128xf32, #tpu.memory_space<vmem>>) attributes {dimension_semantics = [], scalar_prefetch = 0 : i64, scratch_operands = 0 : i64, tpu.core_type = #tpu.core_type<tc>} {
    %c0 = arith.constant 0 : index
    %c0_0 = arith.constant 0 : index
    %0 = vector.load %arg0[%c0, %c0_0] : memref<8x32xf32, #tpu.memory_space<vmem>>, vector<8x32xf32>
    %1 = arith.truncf %0 : vector<8x32xf32> to vector<8x32xbf16>
    %c0_1 = arith.constant 0 : index
    %c0_2 = arith.constant 0 : index
    %c0_3 = arith.constant 0 : index
    %2 = vector.load %arg1[%c0_1, %c0_2, %c0_3] : memref<7x128x128xbf16, #tpu.memory_space<vmem>>, vector<1x128x128xbf16>
    %3 = vector.shape_cast %2 : vector<1x128x128xbf16> to vector<128x128xbf16>
    %4 = vector.extract_strided_slice %3 {offsets = [0, 0], sizes = [32, 128], strides = [1, 1]} : vector<128x128xbf16> to vector<32x128xbf16>
    %cst = arith.constant dense<0.000000e+00> : vector<8x128xf32>
    %5 = tpu.matmul %1, %4, %cst {dimension_numbers = #tpu.dot_dimension_numbers<[1], [0], [0], [1], [0, 0, 1, 1], [], []>} : vector<8x32xbf16>, vector<32x128xbf16>, vector<8x128xf32> -> vector<8x128xf32>
    %cst_4 = arith.constant dense<0.000000e+00> : vector<128xf32>
    %6 = vector.multi_reduction <add>, %5, %cst_4 [0] : vector<8x128xf32> to vector<128xf32>
    %7 = vector.shape_cast %6 : vector<128xf32> to vector<1x128xf32>
    %cst_5 = arith.constant 8.000000e+00 : f32
    %8 = vector.broadcast %cst_5 : f32 to vector<1x128xf32>
    %9 = arith.divf %7, %8 : vector<1x128xf32>
    %10 = vector.broadcast %9 : vector<1x128xf32> to vector<8x128xf32>
    %11 = arith.subf %5, %10 : vector<8x128xf32>
    %12 = arith.mulf %11, %11 : vector<8x128xf32>
    %cst_6 = arith.constant dense<0.000000e+00> : vector<128xf32>
    %13 = vector.multi_reduction <add>, %12, %cst_6 [0] : vector<8x128xf32> to vector<128xf32>
    %14 = vector.shape_cast %13 : vector<128xf32> to vector<1x128xf32>
    %cst_7 = arith.constant 8.000000e+00 : f32
    %15 = vector.broadcast %cst_7 : f32 to vector<1x128xf32>
    %16 = arith.divf %14, %15 : vector<1x128xf32>
    %c0_8 = arith.constant 0 : index
    %c0_9 = arith.constant 0 : index
    %17 = vector.load %arg2[%c0_8, %c0_9] : memref<13x128xf32, #tpu.memory_space<vmem>>, vector<1x128xf32>
    %cst_10 = arith.constant 9.99999974E-6 : f32
    %18 = vector.broadcast %cst_10 : f32 to vector<1x128xf32>
    %19 = arith.addf %16, %18 : vector<1x128xf32>
    %20 = math.rsqrt %19 : vector<1x128xf32>
    %21 = arith.mulf %17, %20 : vector<1x128xf32>
    %c6 = arith.constant 6 : index
    %c0_11 = arith.constant 0 : index
    %22 = vector.load %arg2[%c6, %c0_11] : memref<13x128xf32, #tpu.memory_space<vmem>>, vector<1x128xf32>
    %23 = vector.broadcast %21 : vector<1x128xf32> to vector<8x128xf32>
    %24 = arith.mulf %11, %23 : vector<8x128xf32>
    %25 = vector.broadcast %22 : vector<1x128xf32> to vector<8x128xf32>
    %26 = arith.addf %24, %25 : vector<8x128xf32>
    %cst_12 = arith.constant 0.000000e+00 : f32
    %27 = vector.broadcast %cst_12 : f32 to vector<8x128xf32>
    %28 = arith.maximumf %26, %27 : vector<8x128xf32>
    %29 = arith.truncf %28 : vector<8x128xf32> to vector<8x128xbf16>
    %c1 = arith.constant 1 : index
    %c0_13 = arith.constant 0 : index
    %c0_14 = arith.constant 0 : index
    %30 = vector.load %arg1[%c1, %c0_13, %c0_14] : memref<7x128x128xbf16, #tpu.memory_space<vmem>>, vector<1x128x128xbf16>
    %31 = vector.shape_cast %30 : vector<1x128x128xbf16> to vector<128x128xbf16>
    %cst_15 = arith.constant dense<0.000000e+00> : vector<8x128xf32>
    %32 = tpu.matmul %29, %31, %cst_15 {dimension_numbers = #tpu.dot_dimension_numbers<[1], [0], [0], [1], [0, 0, 1, 1], [], []>} : vector<8x128xbf16>, vector<128x128xbf16>, vector<8x128xf32> -> vector<8x128xf32>
    %cst_16 = arith.constant dense<0.000000e+00> : vector<128xf32>
    %33 = vector.multi_reduction <add>, %32, %cst_16 [0] : vector<8x128xf32> to vector<128xf32>
    %34 = vector.shape_cast %33 : vector<128xf32> to vector<1x128xf32>
    %cst_17 = arith.constant 8.000000e+00 : f32
    %35 = vector.broadcast %cst_17 : f32 to vector<1x128xf32>
    %36 = arith.divf %34, %35 : vector<1x128xf32>
    %37 = vector.broadcast %36 : vector<1x128xf32> to vector<8x128xf32>
    %38 = arith.subf %32, %37 : vector<8x128xf32>
    %39 = arith.mulf %38, %38 : vector<8x128xf32>
    %cst_18 = arith.constant dense<0.000000e+00> : vector<128xf32>
    %40 = vector.multi_reduction <add>, %39, %cst_18 [0] : vector<8x128xf32> to vector<128xf32>
    %41 = vector.shape_cast %40 : vector<128xf32> to vector<1x128xf32>
    %cst_19 = arith.constant 8.000000e+00 : f32
    %42 = vector.broadcast %cst_19 : f32 to vector<1x128xf32>
    %43 = arith.divf %41, %42 : vector<1x128xf32>
    %c1_20 = arith.constant 1 : index
    %c0_21 = arith.constant 0 : index
    %44 = vector.load %arg2[%c1_20, %c0_21] : memref<13x128xf32, #tpu.memory_space<vmem>>, vector<1x128xf32>
    %cst_22 = arith.constant 9.99999974E-6 : f32
    %45 = vector.broadcast %cst_22 : f32 to vector<1x128xf32>
    %46 = arith.addf %43, %45 : vector<1x128xf32>
    %47 = math.rsqrt %46 : vector<1x128xf32>
    %48 = arith.mulf %44, %47 : vector<1x128xf32>
    %c7 = arith.constant 7 : index
    %c0_23 = arith.constant 0 : index
    %49 = vector.load %arg2[%c7, %c0_23] : memref<13x128xf32, #tpu.memory_space<vmem>>, vector<1x128xf32>
    %50 = vector.broadcast %48 : vector<1x128xf32> to vector<8x128xf32>
    %51 = arith.mulf %38, %50 : vector<8x128xf32>
    %52 = vector.broadcast %49 : vector<1x128xf32> to vector<8x128xf32>
    %53 = arith.addf %51, %52 : vector<8x128xf32>
    %cst_24 = arith.constant 0.000000e+00 : f32
    %54 = vector.broadcast %cst_24 : f32 to vector<8x128xf32>
    %55 = arith.maximumf %53, %54 : vector<8x128xf32>
    %56 = arith.truncf %55 : vector<8x128xf32> to vector<8x128xbf16>
    %c2 = arith.constant 2 : index
    %c0_25 = arith.constant 0 : index
    %c0_26 = arith.constant 0 : index
    %57 = vector.load %arg1[%c2, %c0_25, %c0_26] : memref<7x128x128xbf16, #tpu.memory_space<vmem>>, vector<1x128x128xbf16>
    %58 = vector.shape_cast %57 : vector<1x128x128xbf16> to vector<128x128xbf16>
    %cst_27 = arith.constant dense<0.000000e+00> : vector<8x128xf32>
    %59 = tpu.matmul %56, %58, %cst_27 {dimension_numbers = #tpu.dot_dimension_numbers<[1], [0], [0], [1], [0, 0, 1, 1], [], []>} : vector<8x128xbf16>, vector<128x128xbf16>, vector<8x128xf32> -> vector<8x128xf32>
    %cst_28 = arith.constant dense<0.000000e+00> : vector<128xf32>
    %60 = vector.multi_reduction <add>, %59, %cst_28 [0] : vector<8x128xf32> to vector<128xf32>
    %61 = vector.shape_cast %60 : vector<128xf32> to vector<1x128xf32>
    %cst_29 = arith.constant 8.000000e+00 : f32
    %62 = vector.broadcast %cst_29 : f32 to vector<1x128xf32>
    %63 = arith.divf %61, %62 : vector<1x128xf32>
    %64 = vector.broadcast %63 : vector<1x128xf32> to vector<8x128xf32>
    %65 = arith.subf %59, %64 : vector<8x128xf32>
    %66 = arith.mulf %65, %65 : vector<8x128xf32>
    %cst_30 = arith.constant dense<0.000000e+00> : vector<128xf32>
    %67 = vector.multi_reduction <add>, %66, %cst_30 [0] : vector<8x128xf32> to vector<128xf32>
    %68 = vector.shape_cast %67 : vector<128xf32> to vector<1x128xf32>
    %cst_31 = arith.constant 8.000000e+00 : f32
    %69 = vector.broadcast %cst_31 : f32 to vector<1x128xf32>
    %70 = arith.divf %68, %69 : vector<1x128xf32>
    %c2_32 = arith.constant 2 : index
    %c0_33 = arith.constant 0 : index
    %71 = vector.load %arg2[%c2_32, %c0_33] : memref<13x128xf32, #tpu.memory_space<vmem>>, vector<1x128xf32>
    %cst_34 = arith.constant 9.99999974E-6 : f32
    %72 = vector.broadcast %cst_34 : f32 to vector<1x128xf32>
    %73 = arith.addf %70, %72 : vector<1x128xf32>
    %74 = math.rsqrt %73 : vector<1x128xf32>
    %75 = arith.mulf %71, %74 : vector<1x128xf32>
    %c8 = arith.constant 8 : index
    %c0_35 = arith.constant 0 : index
    %76 = vector.load %arg2[%c8, %c0_35] : memref<13x128xf32, #tpu.memory_space<vmem>>, vector<1x128xf32>
    %77 = vector.broadcast %75 : vector<1x128xf32> to vector<8x128xf32>
    %78 = arith.mulf %65, %77 : vector<8x128xf32>
    %79 = vector.broadcast %76 : vector<1x128xf32> to vector<8x128xf32>
    %80 = arith.addf %78, %79 : vector<8x128xf32>
    %cst_36 = arith.constant 0.000000e+00 : f32
    %81 = vector.broadcast %cst_36 : f32 to vector<8x128xf32>
    %82 = arith.maximumf %80, %81 : vector<8x128xf32>
    %83 = arith.truncf %82 : vector<8x128xf32> to vector<8x128xbf16>
    %c3 = arith.constant 3 : index
    %c0_37 = arith.constant 0 : index
    %c0_38 = arith.constant 0 : index
    %84 = vector.load %arg1[%c3, %c0_37, %c0_38] : memref<7x128x128xbf16, #tpu.memory_space<vmem>>, vector<1x128x128xbf16>
    %85 = vector.shape_cast %84 : vector<1x128x128xbf16> to vector<128x128xbf16>
    %cst_39 = arith.constant dense<0.000000e+00> : vector<8x128xf32>
    %86 = tpu.matmul %83, %85, %cst_39 {dimension_numbers = #tpu.dot_dimension_numbers<[1], [0], [0], [1], [0, 0, 1, 1], [], []>} : vector<8x128xbf16>, vector<128x128xbf16>, vector<8x128xf32> -> vector<8x128xf32>
    %cst_40 = arith.constant dense<0.000000e+00> : vector<128xf32>
    %87 = vector.multi_reduction <add>, %86, %cst_40 [0] : vector<8x128xf32> to vector<128xf32>
    %88 = vector.shape_cast %87 : vector<128xf32> to vector<1x128xf32>
    %cst_41 = arith.constant 8.000000e+00 : f32
    %89 = vector.broadcast %cst_41 : f32 to vector<1x128xf32>
    %90 = arith.divf %88, %89 : vector<1x128xf32>
    %91 = vector.broadcast %90 : vector<1x128xf32> to vector<8x128xf32>
    %92 = arith.subf %86, %91 : vector<8x128xf32>
    %93 = arith.mulf %92, %92 : vector<8x128xf32>
    %cst_42 = arith.constant dense<0.000000e+00> : vector<128xf32>
    %94 = vector.multi_reduction <add>, %93, %cst_42 [0] : vector<8x128xf32> to vector<128xf32>
    %95 = vector.shape_cast %94 : vector<128xf32> to vector<1x128xf32>
    %cst_43 = arith.constant 8.000000e+00 : f32
    %96 = vector.broadcast %cst_43 : f32 to vector<1x128xf32>
    %97 = arith.divf %95, %96 : vector<1x128xf32>
    %c3_44 = arith.constant 3 : index
    %c0_45 = arith.constant 0 : index
    %98 = vector.load %arg2[%c3_44, %c0_45] : memref<13x128xf32, #tpu.memory_space<vmem>>, vector<1x128xf32>
    %cst_46 = arith.constant 9.99999974E-6 : f32
    %99 = vector.broadcast %cst_46 : f32 to vector<1x128xf32>
    %100 = arith.addf %97, %99 : vector<1x128xf32>
    %101 = math.rsqrt %100 : vector<1x128xf32>
    %102 = arith.mulf %98, %101 : vector<1x128xf32>
    %c9 = arith.constant 9 : index
    %c0_47 = arith.constant 0 : index
    %103 = vector.load %arg2[%c9, %c0_47] : memref<13x128xf32, #tpu.memory_space<vmem>>, vector<1x128xf32>
    %104 = vector.broadcast %102 : vector<1x128xf32> to vector<8x128xf32>
    %105 = arith.mulf %92, %104 : vector<8x128xf32>
    %106 = vector.broadcast %103 : vector<1x128xf32> to vector<8x128xf32>
    %107 = arith.addf %105, %106 : vector<8x128xf32>
    %cst_48 = arith.constant 0.000000e+00 : f32
    %108 = vector.broadcast %cst_48 : f32 to vector<8x128xf32>
    %109 = arith.maximumf %107, %108 : vector<8x128xf32>
    %110 = arith.truncf %109 : vector<8x128xf32> to vector<8x128xbf16>
    %c4 = arith.constant 4 : index
    %c0_49 = arith.constant 0 : index
    %c0_50 = arith.constant 0 : index
    %111 = vector.load %arg1[%c4, %c0_49, %c0_50] : memref<7x128x128xbf16, #tpu.memory_space<vmem>>, vector<1x128x128xbf16>
    %112 = vector.shape_cast %111 : vector<1x128x128xbf16> to vector<128x128xbf16>
    %cst_51 = arith.constant dense<0.000000e+00> : vector<8x128xf32>
    %113 = tpu.matmul %110, %112, %cst_51 {dimension_numbers = #tpu.dot_dimension_numbers<[1], [0], [0], [1], [0, 0, 1, 1], [], []>} : vector<8x128xbf16>, vector<128x128xbf16>, vector<8x128xf32> -> vector<8x128xf32>
    %cst_52 = arith.constant dense<0.000000e+00> : vector<128xf32>
    %114 = vector.multi_reduction <add>, %113, %cst_52 [0] : vector<8x128xf32> to vector<128xf32>
    %115 = vector.shape_cast %114 : vector<128xf32> to vector<1x128xf32>
    %cst_53 = arith.constant 8.000000e+00 : f32
    %116 = vector.broadcast %cst_53 : f32 to vector<1x128xf32>
    %117 = arith.divf %115, %116 : vector<1x128xf32>
    %118 = vector.broadcast %117 : vector<1x128xf32> to vector<8x128xf32>
    %119 = arith.subf %113, %118 : vector<8x128xf32>
    %120 = arith.mulf %119, %119 : vector<8x128xf32>
    %cst_54 = arith.constant dense<0.000000e+00> : vector<128xf32>
    %121 = vector.multi_reduction <add>, %120, %cst_54 [0] : vector<8x128xf32> to vector<128xf32>
    %122 = vector.shape_cast %121 : vector<128xf32> to vector<1x128xf32>
    %cst_55 = arith.constant 8.000000e+00 : f32
    %123 = vector.broadcast %cst_55 : f32 to vector<1x128xf32>
    %124 = arith.divf %122, %123 : vector<1x128xf32>
    %c4_56 = arith.constant 4 : index
    %c0_57 = arith.constant 0 : index
    %125 = vector.load %arg2[%c4_56, %c0_57] : memref<13x128xf32, #tpu.memory_space<vmem>>, vector<1x128xf32>
    %cst_58 = arith.constant 9.99999974E-6 : f32
    %126 = vector.broadcast %cst_58 : f32 to vector<1x128xf32>
    %127 = arith.addf %124, %126 : vector<1x128xf32>
    %128 = math.rsqrt %127 : vector<1x128xf32>
    %129 = arith.mulf %125, %128 : vector<1x128xf32>
    %c10 = arith.constant 10 : index
    %c0_59 = arith.constant 0 : index
    %130 = vector.load %arg2[%c10, %c0_59] : memref<13x128xf32, #tpu.memory_space<vmem>>, vector<1x128xf32>
    %131 = vector.broadcast %129 : vector<1x128xf32> to vector<8x128xf32>
    %132 = arith.mulf %119, %131 : vector<8x128xf32>
    %133 = vector.broadcast %130 : vector<1x128xf32> to vector<8x128xf32>
    %134 = arith.addf %132, %133 : vector<8x128xf32>
    %cst_60 = arith.constant 0.000000e+00 : f32
    %135 = vector.broadcast %cst_60 : f32 to vector<8x128xf32>
    %136 = arith.maximumf %134, %135 : vector<8x128xf32>
    %137 = arith.truncf %136 : vector<8x128xf32> to vector<8x128xbf16>
    %c5 = arith.constant 5 : index
    %c0_61 = arith.constant 0 : index
    %c0_62 = arith.constant 0 : index
    %138 = vector.load %arg1[%c5, %c0_61, %c0_62] : memref<7x128x128xbf16, #tpu.memory_space<vmem>>, vector<1x128x128xbf16>
    %139 = vector.shape_cast %138 : vector<1x128x128xbf16> to vector<128x128xbf16>
    %cst_63 = arith.constant dense<0.000000e+00> : vector<8x128xf32>
    %140 = tpu.matmul %137, %139, %cst_63 {dimension_numbers = #tpu.dot_dimension_numbers<[1], [0], [0], [1], [0, 0, 1, 1], [], []>} : vector<8x128xbf16>, vector<128x128xbf16>, vector<8x128xf32> -> vector<8x128xf32>
    %cst_64 = arith.constant dense<0.000000e+00> : vector<128xf32>
    %141 = vector.multi_reduction <add>, %140, %cst_64 [0] : vector<8x128xf32> to vector<128xf32>
    %142 = vector.shape_cast %141 : vector<128xf32> to vector<1x128xf32>
    %cst_65 = arith.constant 8.000000e+00 : f32
    %143 = vector.broadcast %cst_65 : f32 to vector<1x128xf32>
    %144 = arith.divf %142, %143 : vector<1x128xf32>
    %145 = vector.broadcast %144 : vector<1x128xf32> to vector<8x128xf32>
    %146 = arith.subf %140, %145 : vector<8x128xf32>
    %147 = arith.mulf %146, %146 : vector<8x128xf32>
    %cst_66 = arith.constant dense<0.000000e+00> : vector<128xf32>
    %148 = vector.multi_reduction <add>, %147, %cst_66 [0] : vector<8x128xf32> to vector<128xf32>
    %149 = vector.shape_cast %148 : vector<128xf32> to vector<1x128xf32>
    %cst_67 = arith.constant 8.000000e+00 : f32
    %150 = vector.broadcast %cst_67 : f32 to vector<1x128xf32>
    %151 = arith.divf %149, %150 : vector<1x128xf32>
    %c5_68 = arith.constant 5 : index
    %c0_69 = arith.constant 0 : index
    %152 = vector.load %arg2[%c5_68, %c0_69] : memref<13x128xf32, #tpu.memory_space<vmem>>, vector<1x128xf32>
    %cst_70 = arith.constant 9.99999974E-6 : f32
    %153 = vector.broadcast %cst_70 : f32 to vector<1x128xf32>
    %154 = arith.addf %151, %153 : vector<1x128xf32>
    %155 = math.rsqrt %154 : vector<1x128xf32>
    %156 = arith.mulf %152, %155 : vector<1x128xf32>
    %c11 = arith.constant 11 : index
    %c0_71 = arith.constant 0 : index
    %157 = vector.load %arg2[%c11, %c0_71] : memref<13x128xf32, #tpu.memory_space<vmem>>, vector<1x128xf32>
    %158 = vector.broadcast %156 : vector<1x128xf32> to vector<8x128xf32>
    %159 = arith.mulf %146, %158 : vector<8x128xf32>
    %160 = vector.broadcast %157 : vector<1x128xf32> to vector<8x128xf32>
    %161 = arith.addf %159, %160 : vector<8x128xf32>
    %cst_72 = arith.constant 0.000000e+00 : f32
    %162 = vector.broadcast %cst_72 : f32 to vector<8x128xf32>
    %163 = arith.maximumf %161, %162 : vector<8x128xf32>
    %164 = arith.truncf %163 : vector<8x128xf32> to vector<8x128xbf16>
    %c6_73 = arith.constant 6 : index
    %c0_74 = arith.constant 0 : index
    %c0_75 = arith.constant 0 : index
    %165 = vector.load %arg1[%c6_73, %c0_74, %c0_75] : memref<7x128x128xbf16, #tpu.memory_space<vmem>>, vector<1x128x128xbf16>
    %166 = vector.shape_cast %165 : vector<1x128x128xbf16> to vector<128x128xbf16>
    %cst_76 = arith.constant dense<0.000000e+00> : vector<8x128xf32>
    %167 = tpu.matmul %164, %166, %cst_76 {dimension_numbers = #tpu.dot_dimension_numbers<[1], [0], [0], [1], [0, 0, 1, 1], [], []>} : vector<8x128xbf16>, vector<128x128xbf16>, vector<8x128xf32> -> vector<8x128xf32>
    %c12 = arith.constant 12 : index
    %c0_77 = arith.constant 0 : index
    %168 = vector.load %arg2[%c12, %c0_77] : memref<13x128xf32, #tpu.memory_space<vmem>>, vector<1x128xf32>
    %169 = vector.broadcast %168 : vector<1x128xf32> to vector<8x128xf32>
    %170 = arith.addf %167, %169 : vector<8x128xf32>
    %c0_78 = arith.constant 0 : index
    %c0_79 = arith.constant 0 : index
    %171 = vector.load %arg3[%c0_78, %c0_79] : memref<8x128xf32, #tpu.memory_space<vmem>>, vector<8x128xf32>
    tpu.vector_store %arg3[%c0_78, %c0_79], %170 {strides = array<i32>} : memref<8x128xf32, #tpu.memory_space<vmem>>, vector<8x128xf32>,
    return
  }
}

</mosaic_0001>

<bundles_post_ra>
// kernel: hidden_nn_forward.1
= control target key start
LH: loop header
LB: loop body
LE: loop exit
PB: predicated region body
PF: predicated region fallthrough
CT: control target
= control target key end

     0   :  { %8 = vsyncpa [#allocation3], 0  ;;  %s1527_s0 = inlined_call_operand.hbm [shape: f32[8,32], index: 0, kind: input, shape index: {}]   ;;  %s1528_s1 = inlined_call_operand.hbm [shape: bf16[7,128,128], index: 1, kind: input, shape index: {}]   ;;  %s1529_s2 = inlined_call_operand.hbm [shape: f32[13,128], index: 2, kind: input, shape index: {}]   ;;  %s1530_s3 = inlined_call_operand.hbm [shape: f32[8,128], index: 3, kind: output, shape index: {}]  }
   0x1   :  { %9 = vsyncpa [#allocation6], 0 }
   0x2   :  { %10 = vsyncpa [#allocation4], 0  ;;  %s1377_s12 = smov [#allocation5]   ;;  %s1283_s16 = scalar_lea.hbm %s1528_s1, 7168 }
   0x3   :  { %s26_s13 = sshll.u32 %s1377_s12, 4  ;;  %p1284_p0 = scmp.ne.s32.totalorder %s1528_s1, %s1283_s16  ;;  %s27_s13 = int_to_ptr.vmem [resolvable:$true] %s26_s13 }
   0x4   :  { %p1287_p1 = scmp.lt.u32.totalorder %s1283_s16, %s1528_s1 }
   0x6   :  { %p1289_p2 = pnand %p1287_p1, %p1284_p0 }
   0x8   :  { %1292 = shalt.err (!%p1289_p2)
}
   0x9   :  { %s1293_s21 = scalar_lea.vmem %s27_s13, 7168  ;;  %p1298_p4 = scmp.lt.s32.totalorder %s27_s13, %s27_s13 }
   0xa   :  { %p1294_p3 = scmp.ne.s32.totalorder %s27_s13, %s1293_s21  ;;  %p1299_p5 = scmp.lt.s32.totalorder %s1293_s21, %s1293_s21 }
   0xc   :  { %p1300_p6 = por %p1299_p5, %p1298_p4 }
   0xe   :  { %p1301_p7 = pnand %p1300_p6, %p1294_p3 }
  0x10   :  { %1304 = shalt.err (!%p1301_p7)
}
  0x11   :  { %s1378_s22 = smov 64   ;;  %s1379_s23 = smov 4  }
  0x12   :  { %32 = dma.hbm_to_vmem [thread:$0]  %s1528_s1, 7168, %s27_s13, [#allocation6], %s1378_s22, %s1378_s22, %s1379_s23  }
  0x13   :  { %s1380_s26 = smov [#allocation2]   ;;  %s1381_s28 = smov [#allocation7]  }
  0x14   :  { %s17_s27 = sshll.u32 %s1380_s26, 4  ;;  %s38_s29 = sshll.u32 %s1381_s28, 4  ;;  %s18_s27 = int_to_ptr.vmem [resolvable:$true] %s17_s27  ;;  %s39_s29 = int_to_ptr.vmem [resolvable:$true] %s38_s29 }
  0x15   :  { %s1305_s5 = scalar_lea.hbm %s1527_s0, 128 }
  0x16   :  { %p1306_p8 = scmp.ne.s32.totalorder %s1527_s0, %s1305_s5  ;;  %p1309_p9 = scmp.lt.u32.totalorder %s1305_s5, %s1527_s0 }
  0x18   :  { %p1311_p10 = pnand %p1309_p9, %p1306_p8 }
  0x1a   :  { %1314 = shalt.err (!%p1311_p10)
}
  0x1b   :  { %s1315_s1 = scalar_lea.vmem %s18_s27, 128  ;;  %p1320_p12 = scmp.lt.s32.totalorder %s18_s27, %s18_s27 }
  0x1c   :  { %p1316_p11 = scmp.ne.s32.totalorder %s18_s27, %s1315_s1  ;;  %p1321_p13 = scmp.lt.s32.totalorder %s1315_s1, %s1315_s1 }
  0x1e   :  { %p1322_p0 = por %p1321_p13, %p1320_p12 }
  0x20   :  { %p1323_p1 = pnand %p1322_p0, %p1316_p11 }
  0x22   :  { %1326 = shalt.err (!%p1323_p1)
}
  0x23   :  { %20 = dma.hbm_to_vmem [thread:$0]  %s1527_s0, 128, %s18_s27, [#allocation3]  }
  0x24   :  { %s1327_s14 = scalar_lea.hbm %s1529_s2, 256 }
  0x25   :  { %p1328_p2 = scmp.ne.s32.totalorder %s1529_s2, %s1327_s14  ;;  %p1331_p3 = scmp.lt.u32.totalorder %s1327_s14, %s1529_s2 }
  0x27   :  { %p1333_p4 = pnand %p1331_p3, %p1328_p2 }
  0x29   :  { %1336 = shalt.err (!%p1333_p4)
}
  0x2a   :  { %s1337_s19 = scalar_lea.vmem %s39_s29, 256  ;;  %p1342_p6 = scmp.lt.s32.totalorder %s39_s29, %s39_s29 }
  0x2b   :  { %p1338_p5 = scmp.ne.s32.totalorder %s39_s29, %s1337_s19  ;;  %p1343_p7 = scmp.lt.s32.totalorder %s1337_s19, %s1337_s19 }
  0x2d   :  { %p1344_p8 = por %p1343_p7, %p1342_p6 }
  0x2f   :  { %p1345_p9 = pnand %p1344_p8, %p1338_p5 }
  0x31   :  { %1348 = shalt.err (!%p1345_p9)
}
  0x32   :  { %s1382_s0 = smov 128   ;;  %s1383_s20 = smov 8  }
  0x33   :  { %44 = dma.hbm_to_vmem [thread:$0]  %s1529_s2, 256, %s39_s29, [#allocation6], %s1382_s0, %s1382_s0, %s1383_s20  }
  0x34   :  { %1371 = dma.done.wait [#allocation3], 128  }
  0x35   :  { %1372 = vsyncadd [#allocation3], 4294967168 }
  0x36   :  { %1373 = dma.done.wait [#allocation6], 7424  }
  0x37   :  { %1374 = vsyncadd [#allocation6], 4294959872  ;;  %v1384_v0 = vmov 0.0   ;;  %vm1385_vm0 = vmmov 0   ;;  %v1221_v1 = vld [vmem:[#allocation5] sm:$0xff]   ;;  %v1222_v2 = vld [vmem:[#allocation5 + $0x8] sm:$0xff]   ;;  %v139_v34 = vlaneseq }
  0x38   :  { %1083 = vmatprep.subr.bf16.mxu0 %v1384_v0  ;;  %1087 = vmatprep.mubr.msk.bf16.mxu0 %vm1385_vm0, %v1384_v0  ;;  %v55_v3 = vld [vmem:[#allocation2] sm:$0xff]  ;;  %vm73_vm1 = vcmask 261120   ;;  %v1223_v5 = vld [vmem:[#allocation5 + $0x40] sm:$0xff]   ;;  %v1224_v6 = vld [vmem:[#allocation5 + $0x48] sm:$0xff]   ;;  %s1386_s2 = smov [#allocation8]  }
  0x39   :  { %1091 = vmatprep.subr.bf16.mxu1 %v1384_v0  ;;  %1107 = vmatprep.mubr.msk.bf16.mxu1 %vm1385_vm0, %v1384_v0  ;;  %v56_v4 = vpack.c.bf16 %v55_v3, %v55_v3  ;;  %v1225_v7 = vld [vmem:[#allocation5 + $0x50] sm:$0xff]   ;;  %v1226_v8 = vld [vmem:[#allocation5 + $0x58] sm:$0xff]   ;;  %v1227_v9 = vld [vmem:[#allocation5 + $0x60] sm:$0xff]   ;;  %v140_v35 = vshrl.u32 %v139_v34, 7  ;;  %s958_s23 = sshll.u32 %s1386_s2, 4  ;;  %s959_s23 = int_to_ptr.vmem [resolvable:$true] %s958_s23 }
  0x3a   :  { %1084 = vmatpush3.bf16.msra.mxu0 %v1221_v1  ;;  %1092 = vmatpush3.bf16.msra.mxu1 %v1223_v5  ;;  %v1228_v10 = vld [vmem:[#allocation5 + $0x68] sm:$0xff]   ;;  %v1229_v11 = vld [vmem:[#allocation5 + $0x70] sm:$0xff]   ;;  %v1230_v12 = vld [vmem:[#allocation5 + $0x78] sm:$0xff]   ;;  %s1349_s24 = scalar_lea.vmem %s959_s23, 128  ;;  %p1354_p11 = scmp.lt.s32.totalorder %s959_s23, %s959_s23 }
  0x3b   :  { %1085 = vmatprep.subr.bf16.mxu0 %v1384_v0  ;;  %1093 = vmatprep.subr.bf16.mxu1 %v1384_v0  ;;  %v134_v36 = vld [vmem:[#allocation7] sm:$0x1]  ;;  %v1461_v37 = vsub.s32 0, %v140_v35  ;;  %v971_v41 = vld [vmem:[#allocation7 + $0x6] ss:$0 sm:$0xff]  ;;  %v1232_v47 = vld [vmem:[#allocation5 + $0x88] sm:$0xff]   ;;  %p1350_p10 = scmp.ne.s32.totalorder %s959_s23, %s1349_s24  ;;  %p1355_p12 = scmp.lt.s32.totalorder %s1349_s24, %s1349_s24 }
  0x3c   :  { %v1231_v46 = vld [vmem:[#allocation5 + $0x80] sm:$0xff]   ;;  %v1233_v48 = vld [vmem:[#allocation5 + $0x90] sm:$0xff]   ;;  %v1234_v49 = vld [vmem:[#allocation5 + $0x98] sm:$0xff]  }
  0x3d   :  { %v1235_v50 = vld [vmem:[#allocation5 + $0xa0] sm:$0xff]   ;;  %v1236_v51 = vld [vmem:[#allocation5 + $0xa8] sm:$0xff]   ;;  %v1237_v52 = vld [vmem:[#allocation5 + $0xb0] sm:$0xff]   ;;  %p1356_p13 = por %p1355_p12, %p1354_p11 }
  0x3e   :  { %1086 = vmatpush3.bf16.msra.mxu0 %v1222_v2  ;;  %1094 = vmatpush3.bf16.msra.mxu1 %v1224_v6  ;;  %v1238_v53 = vld [vmem:[#allocation5 + $0xb8] sm:$0xff]  }
  0x3f   :  { %1111 = vmatprep.subr.bf16.mxu0 %v1384_v0  ;;  %1095 = vmatprep.subr.bf16.mxu1 %v1384_v0  ;;  %p1357_p0 = pnand %p1356_p13, %p1350_p10 }
  0x41   :  { %1088 = vmatmul.mubr.msk.bf16.vlgmr.msra.gmra.mrb[0].mxu0 %vm73_vm1, %v56_v4 }
  0x42   :  { %1127 = vmatprep.mubr.msk.bf16.mxu0 %vm1385_vm0, %v1384_v0  ;;  %1096 = vmatpush3.bf16.msra.mxu1 %v1225_v7 }
  0x43   :  { %1097 = vmatprep.subr.bf16.mxu1 %v1384_v0  ;;  %1112 = vmatpush3.bf16.msra.mxu0 %v1231_v46 }
  0x44   :  { %1113 = vmatprep.subr.bf16.mxu0 %v1384_v0 }
  0x46   :  { %1098 = vmatpush3.bf16.msra.mxu1 %v1226_v8 }
  0x47   :  { %1099 = vmatprep.subr.bf16.mxu1 %v1384_v0  ;;  %1114 = vmatpush3.bf16.msra.mxu0 %v1232_v47 }
  0x48   :  { %1115 = vmatprep.subr.bf16.mxu0 %v1384_v0 }
  0x4a   :  { %1100 = vmatpush3.bf16.msra.mxu1 %v1227_v9 }
  0x4b   :  { %1101 = vmatprep.subr.bf16.mxu1 %v1384_v0  ;;  %1116 = vmatpush3.bf16.msra.mxu0 %v1233_v48 }
  0x4c   :  { %1117 = vmatprep.subr.bf16.mxu0 %v1384_v0 }
  0x4e   :  { %1102 = vmatpush3.bf16.msra.mxu1 %v1228_v10 }
  0x4f   :  { %1103 = vmatprep.subr.bf16.mxu1 %v1384_v0  ;;  %1118 = vmatpush3.bf16.msra.mxu0 %v1234_v49 }
  0x50   :  { %1119 = vmatprep.subr.bf16.mxu0 %v1384_v0 }
  0x52   :  { %1104 = vmatpush3.bf16.msra.mxu1 %v1229_v11 }
  0x53   :  { %1105 = vmatprep.subr.bf16.mxu1 %v1384_v0  ;;  %1120 = vmatpush3.bf16.msra.mxu0 %v1235_v50 }
  0x54   :  { %1121 = vmatprep.subr.bf16.mxu0 %v1384_v0 }
  0x56   :  { %1106 = vmatpush3.bf16.msra.mxu1 %v1230_v12  ;;  %v272_v12 = vld [vmem:[#allocation7 + $0x1] sm:$0x1] }
  0x57   :  { %1131 = vmatprep.subr.bf16.mxu1 %v1384_v0  ;;  %1122 = vmatpush3.bf16.msra.mxu0 %v1236_v51  ;;  %v410_v51 = vld [vmem:[#allocation7 + $0x2] sm:$0x1] }
  0x58   :  { %1123 = vmatprep.subr.bf16.mxu0 %v1384_v0 }
  0x5b   :  { %1124 = vmatpush3.bf16.msra.mxu0 %v1237_v52 }
  0x5c   :  { %1125 = vmatprep.subr.bf16.mxu0 %v1384_v0 }
  0x5f   :  { %1126 = vmatpush3.bf16.msra.mxu0 %v1238_v53 }
  0x60   :  { %1151 = vmatprep.subr.bf16.mxu0 %v1384_v0 }
 0x114   :  { %v111_v13 = vpop.f32.mrb[0].mxu0 }
 0x115   :  { %v117_v14 = vrot.slane %v111_v13, 4  ;;  %v1089_v15 = vpop.f32.mrb[1].mxu0 }
 0x116   :  { %v114_v16 = vpop.f32.mrb[2].mxu0 }
 0x117   :  { %v118_v17 = vadd.f32 %v117_v14, %v111_v13  ;;  %v1090_v18 = vpop.f32.mrb[3].mxu0  ;;  %v980_v16 = vld [vmem:[#allocation7 + $0x7] ss:$0 sm:$0xff] }
 0x119   :  { %v119_v19 = vrot.slane %v118_v17, 2 }
 0x11b   :  { %v120_v20 = vadd.f32 %v119_v19, %v118_v17 }
 0x11d   :  { %v121_v21 = vrot.slane %v120_v20, 1 }
 0x11f   :  { %v122_v22 = vadd.f32 %v121_v21, %v120_v20  ;;  %v1239_v21 = vld [vmem:[#allocation5 + $0xc0] sm:$0xff]  }
 0x121   :  { %v124_v23 = vmul.f32 0.125, %v122_v22  ;;  %v1240_v22 = vld [vmem:[#allocation5 + $0xc8] sm:$0xff]  }
 0x123   :  { %v125_v24 = vsub.f32 %v111_v13, %v124_v23  ;;  %v1241_v23 = vld [vmem:[#allocation5 + $0xd0] sm:$0xff]  }
 0x125   :  { %v126_v25 = vmul.f32 %v125_v24, %v125_v24 }
 0x127   :  { %v127_v26 = vrot.slane %v126_v25, 4 }
 0x129   :  { %v128_v27 = vadd.f32 %v127_v26, %v126_v25  ;;  %v1243_v25 = vld [vmem:[#allocation5 + $0xe0] sm:$0xff]   ;;  %v1244_v26 = vld [vmem:[#allocation5 + $0xe8] sm:$0xff]  }
 0x12b   :  { %v129_v28 = vrot.slane %v128_v27, 2 }
 0x12d   :  { %v130_v29 = vadd.f32 %v129_v28, %v128_v27  ;;  %v1245_v27 = vld [vmem:[#allocation5 + $0xf0] sm:$0xff]   ;;  %v1246_v28 = vld [vmem:[#allocation5 + $0xf8] sm:$0xff]  }
 0x12f   :  { %v131_v30 = vrot.slane %v130_v29, 1 }
 0x131   :  { %v132_v31 = vadd.f32 %v131_v30, %v130_v29 }
 0x133   :  { %v133_v32 = vmul.f32 0.125, %v132_v31 }
 0x135   :  { %v135_v33 = vadd.f32 1e-05, %v133_v32 }
 0x137   :  { %1271 = vrsqrt.f32 %v135_v33 }
 0x141   :  { %v1272_v38 = vpop.eup %1271 }
 0x142   :  { %v137_v39 = vmul.f32 %v1272_v38, %v134_v36 }
 0x144   :  { %v142_v40 = vrot.slane %v137_v39, %v1461_v37 }
 0x146   :  { %v143_v42 = vmul.f32 %v142_v40, %v125_v24  ;;  %v1242_v24 = vld [vmem:[#allocation5 + $0xd8] sm:$0xff]  }
 0x148   :  { %v148_v43 = vadd.f32 %v971_v41, %v143_v42 }
 0x14a   :  { %v149_v44 = vmax.f32 %v148_v43, 0.0 }
 0x14c   :  { %v150_v45 = vpack.c.bf16 %v149_v44, %v149_v44 }
 0x14e   :  { %1108 = vmatmul.mubr.bf16.vlgmr.msra.gmra.mrb[0].mxu1 %v150_v45 }
 0x14f   :  { %1147 = vmatprep.mubr.msk.bf16.mxu1 %vm1385_vm0, %v1384_v0  ;;  %1132 = vmatpush3.bf16.msra.mxu1 %v1239_v21 }
 0x150   :  { %1133 = vmatprep.subr.bf16.mxu1 %v1384_v0 }
 0x153   :  { %1134 = vmatpush3.bf16.msra.mxu1 %v1240_v22 }
 0x154   :  { %1135 = vmatprep.subr.bf16.mxu1 %v1384_v0 }
 0x157   :  { %1136 = vmatpush3.bf16.msra.mxu1 %v1241_v23 }
 0x158   :  { %1137 = vmatprep.subr.bf16.mxu1 %v1384_v0 }
 0x15b   :  { %1138 = vmatpush3.bf16.msra.mxu1 %v1242_v24 }
 0x15c   :  { %1139 = vmatprep.subr.bf16.mxu1 %v1384_v0 }
 0x15f   :  { %1140 = vmatpush3.bf16.msra.mxu1 %v1243_v25 }
 0x160   :  { %1141 = vmatprep.subr.bf16.mxu1 %v1384_v0 }
 0x163   :  { %1142 = vmatpush3.bf16.msra.mxu1 %v1244_v26  ;;  %v548_v26 = vld [vmem:[#allocation7 + $0x3] sm:$0x1] }
 0x164   :  { %1143 = vmatprep.subr.bf16.mxu1 %v1384_v0 }
 0x167   :  { %1144 = vmatpush3.bf16.msra.mxu1 %v1245_v27 }
 0x168   :  { %1145 = vmatprep.subr.bf16.mxu1 %v1384_v0 }
 0x16b   :  { %1146 = vmatpush3.bf16.msra.mxu1 %v1246_v28 }
 0x16c   :  { %1171 = vmatprep.subr.bf16.mxu1 %v1384_v0 }
 0x221   :  { %v250_v54 = vpop.f32.mrb[0].mxu1 }
 0x222   :  { %v256_v55 = vrot.slane %v250_v54, 4  ;;  %v1109_v56 = vpop.f32.mrb[1].mxu1 }
 0x223   :  { %v253_v57 = vpop.f32.mrb[2].mxu1 }
 0x224   :  { %v257_v58 = vadd.f32 %v256_v55, %v250_v54  ;;  %v1110_v59 = vpop.f32.mrb[3].mxu1  ;;  %v989_v55 = vld [vmem:[#allocation7 + $0x8] ss:$0 sm:$0xff] }
 0x226   :  { %v258_v60 = vrot.slane %v257_v58, 2 }
 0x228   :  { %v259_v61 = vadd.f32 %v258_v60, %v257_v58  ;;  %v1247_v60 = vld [vmem:[#allocation5 + $0x100] sm:$0xff]  }
 0x22a   :  { %v260_v62 = vrot.slane %v259_v61, 1 }
 0x22c   :  { %v261_v63 = vadd.f32 %v260_v62, %v259_v61  ;;  %v1248_v61 = vld [vmem:[#allocation5 + $0x108] sm:$0xff]   ;;  %v1249_v62 = vld [vmem:[#allocation5 + $0x110] sm:$0xff]  }
 0x22e   :  { %v262_v1 = vmul.f32 0.125, %v261_v63  ;;  %v1250_v63 = vld [vmem:[#allocation5 + $0x118] sm:$0xff]  }
 0x230   :  { %v263_v2 = vsub.f32 %v250_v54, %v262_v1  ;;  %v1251_v1 = vld [vmem:[#allocation5 + $0x120] sm:$0xff]  }
 0x232   :  { %v264_v3 = vmul.f32 %v263_v2, %v263_v2 }
 0x234   :  { %v265_v4 = vrot.slane %v264_v3, 4 }
 0x236   :  { %v266_v5 = vadd.f32 %v265_v4, %v264_v3  ;;  %v1253_v3 = vld [vmem:[#allocation5 + $0x130] sm:$0xff]   ;;  %v1254_v4 = vld [vmem:[#allocation5 + $0x138] sm:$0xff]  }
 0x238   :  { %v267_v6 = vrot.slane %v266_v5, 2 }
 0x23a   :  { %v268_v7 = vadd.f32 %v267_v6, %v266_v5 }
 0x23c   :  { %v269_v8 = vrot.slane %v268_v7, 1 }
 0x23e   :  { %v270_v9 = vadd.f32 %v269_v8, %v268_v7 }
 0x240   :  { %v271_v10 = vmul.f32 0.125, %v270_v9 }
 0x242   :  { %v273_v11 = vadd.f32 1e-05, %v271_v10 }
 0x244   :  { %1273 = vrsqrt.f32 %v273_v11 }
 0x24e   :  { %v1274_v13 = vpop.eup %1273 }
 0x24f   :  { %v275_v14 = vmul.f32 %v1274_v13, %v272_v12 }
 0x251   :  { %v280_v15 = vrot.slane %v275_v14, %v1461_v37 }
 0x253   :  { %v281_v17 = vmul.f32 %v280_v15, %v263_v2  ;;  %v1252_v2 = vld [vmem:[#allocation5 + $0x128] sm:$0xff]  }
 0x255   :  { %v286_v18 = vadd.f32 %v980_v16, %v281_v17 }
 0x257   :  { %v287_v19 = vmax.f32 %v286_v18, 0.0 }
 0x259   :  { %v288_v20 = vpack.c.bf16 %v287_v19, %v287_v19 }
 0x25b   :  { %1128 = vmatmul.mubr.bf16.vlgmr.msra.gmra.mrb[4].mxu0 %v288_v20 }
 0x25c   :  { %1167 = vmatprep.mubr.msk.bf16.mxu0 %vm1385_vm0, %v1384_v0  ;;  %1152 = vmatpush3.bf16.msra.mxu0 %v1247_v60 }
 0x25d   :  { %1153 = vmatprep.subr.bf16.mxu0 %v1384_v0 }
 0x260   :  { %1154 = vmatpush3.bf16.msra.mxu0 %v1248_v61 }
 0x261   :  { %1155 = vmatprep.subr.bf16.mxu0 %v1384_v0 }
 0x264   :  { %1156 = vmatpush3.bf16.msra.mxu0 %v1249_v62 }
 0x265   :  { %1157 = vmatprep.subr.bf16.mxu0 %v1384_v0 }
 0x268   :  { %1158 = vmatpush3.bf16.msra.mxu0 %v1250_v63 }
 0x269   :  { %1159 = vmatprep.subr.bf16.mxu0 %v1384_v0 }
 0x26c   :  { %1160 = vmatpush3.bf16.msra.mxu0 %v1251_v1 }
 0x26d   :  { %1161 = vmatprep.subr.bf16.mxu0 %v1384_v0 }
 0x270   :  { %1162 = vmatpush3.bf16.msra.mxu0 %v1252_v2  ;;  %v686_v2 = vld [vmem:[#allocation7 + $0x4] sm:$0x1] }
 0x271   :  { %1163 = vmatprep.subr.bf16.mxu0 %v1384_v0 }
 0x274   :  { %1164 = vmatpush3.bf16.msra.mxu0 %v1253_v3 }
 0x275   :  { %1165 = vmatprep.subr.bf16.mxu0 %v1384_v0 }
 0x278   :  { %1166 = vmatpush3.bf16.msra.mxu0 %v1254_v4 }
 0x279   :  { %1191 = vmatprep.subr.bf16.mxu0 %v1384_v0 }
 0x32e   :  { %v388_v29 = vpop.f32.mrb[4].mxu0 }
 0x32f   :  { %v394_v30 = vrot.slane %v388_v29, 4  ;;  %v1129_v31 = vpop.f32.mrb[5].mxu0 }
 0x330   :  { %v391_v32 = vpop.f32.mrb[6].mxu0 }
 0x331   :  { %v395_v33 = vadd.f32 %v394_v30, %v388_v29  ;;  %v1130_v34 = vpop.f32.mrb[7].mxu0  ;;  %v998_v30 = vld [vmem:[#allocation7 + $0x9] ss:$0 sm:$0xff] }
 0x333   :  { %v396_v35 = vrot.slane %v395_v33, 2 }
 0x335   :  { %v397_v36 = vadd.f32 %v396_v35, %v395_v33  ;;  %v1255_v35 = vld [vmem:[#allocation5 + $0x140] sm:$0xff]  }
 0x337   :  { %v398_v38 = vrot.slane %v397_v36, 1 }
 0x339   :  { %v399_v39 = vadd.f32 %v398_v38, %v397_v36  ;;  %v1256_v36 = vld [vmem:[#allocation5 + $0x148] sm:$0xff]   ;;  %v1257_v38 = vld [vmem:[#allocation5 + $0x150] sm:$0xff]  }
 0x33b   :  { %v400_v40 = vmul.f32 0.125, %v399_v39  ;;  %v1258_v39 = vld [vmem:[#allocation5 + $0x158] sm:$0xff]  }
 0x33d   :  { %v401_v41 = vsub.f32 %v388_v29, %v400_v40  ;;  %v1259_v40 = vld [vmem:[#allocation5 + $0x160] sm:$0xff]  }
 0x33f   :  { %v402_v42 = vmul.f32 %v401_v41, %v401_v41 }
 0x341   :  { %v403_v43 = vrot.slane %v402_v42, 4 }
 0x343   :  { %v404_v44 = vadd.f32 %v403_v43, %v402_v42  ;;  %v1261_v42 = vld [vmem:[#allocation5 + $0x170] sm:$0xff]   ;;  %v1262_v43 = vld [vmem:[#allocation5 + $0x178] sm:$0xff]  }
 0x345   :  { %v405_v45 = vrot.slane %v404_v44, 2 }
 0x347   :  { %v406_v46 = vadd.f32 %v405_v45, %v404_v44 }
 0x349   :  { %v407_v47 = vrot.slane %v406_v46, 1 }
 0x34b   :  { %v408_v48 = vadd.f32 %v407_v47, %v406_v46 }
 0x34d   :  { %v409_v49 = vmul.f32 0.125, %v408_v48 }
 0x34f   :  { %v411_v50 = vadd.f32 1e-05, %v409_v49 }
 0x351   :  { %1275 = vrsqrt.f32 %v411_v50 }
 0x35b   :  { %v1276_v52 = vpop.eup %1275 }
 0x35c   :  { %v413_v53 = vmul.f32 %v1276_v52, %v410_v51 }
 0x35e   :  { %v418_v54 = vrot.slane %v413_v53, %v1461_v37 }
 0x360   :  { %v419_v56 = vmul.f32 %v418_v54, %v401_v41  ;;  %v1260_v41 = vld [vmem:[#allocation5 + $0x168] sm:$0xff]  }
 0x362   :  { %v424_v57 = vadd.f32 %v989_v55, %v419_v56 }
 0x364   :  { %v425_v58 = vmax.f32 %v424_v57, 0.0 }
 0x366   :  { %v426_v59 = vpack.c.bf16 %v425_v58, %v425_v58 }
 0x368   :  { %1148 = vmatmul.mubr.bf16.vlgmr.msra.gmra.mrb[4].mxu1 %v426_v59 }
 0x369   :  { %1187 = vmatprep.mubr.msk.bf16.mxu1 %vm1385_vm0, %v1384_v0  ;;  %1172 = vmatpush3.bf16.msra.mxu1 %v1255_v35 }
 0x36a   :  { %1173 = vmatprep.subr.bf16.mxu1 %v1384_v0 }
 0x36d   :  { %1174 = vmatpush3.bf16.msra.mxu1 %v1256_v36 }
 0x36e   :  { %1175 = vmatprep.subr.bf16.mxu1 %v1384_v0 }
 0x371   :  { %1176 = vmatpush3.bf16.msra.mxu1 %v1257_v38 }
 0x372   :  { %1177 = vmatprep.subr.bf16.mxu1 %v1384_v0 }
 0x375   :  { %1178 = vmatpush3.bf16.msra.mxu1 %v1258_v39 }
 0x376   :  { %1179 = vmatprep.subr.bf16.mxu1 %v1384_v0 }
 0x379   :  { %1180 = vmatpush3.bf16.msra.mxu1 %v1259_v40  ;;  %v824_v40 = vld [vmem:[#allocation7 + $0x5] sm:$0x1] }
 0x37a   :  { %1181 = vmatprep.subr.bf16.mxu1 %v1384_v0 }
 0x37d   :  { %1182 = vmatpush3.bf16.msra.mxu1 %v1260_v41 }
 0x37e   :  { %1183 = vmatprep.subr.bf16.mxu1 %v1384_v0 }
 0x381   :  { %1184 = vmatpush3.bf16.msra.mxu1 %v1261_v42 }
 0x382   :  { %1185 = vmatprep.subr.bf16.mxu1 %v1384_v0 }
 0x385   :  { %1186 = vmatpush3.bf16.msra.mxu1 %v1262_v43 }
 0x43b   :  { %v526_v5 = vpop.f32.mrb[4].mxu1 }
 0x43c   :  { %v532_v6 = vrot.slane %v526_v5, 4  ;;  %v1149_v7 = vpop.f32.mrb[5].mxu1 }
 0x43d   :  { %v529_v8 = vpop.f32.mrb[6].mxu1 }
 0x43e   :  { %v533_v9 = vadd.f32 %v532_v6, %v526_v5  ;;  %v1150_v10 = vpop.f32.mrb[7].mxu1  ;;  %v1007_v6 = vld [vmem:[#allocation7 + $0xa] ss:$0 sm:$0xff] }
 0x440   :  { %v534_v11 = vrot.slane %v533_v9, 2 }
 0x442   :  { %v535_v12 = vadd.f32 %v534_v11, %v533_v9  ;;  %v1263_v11 = vld [vmem:[#allocation5 + $0x180] sm:$0xff]  }
 0x444   :  { %v536_v13 = vrot.slane %v535_v12, 1 }
 0x446   :  { %v537_v14 = vadd.f32 %v536_v13, %v535_v12  ;;  %v1264_v12 = vld [vmem:[#allocation5 + $0x188] sm:$0xff]   ;;  %v1265_v13 = vld [vmem:[#allocation5 + $0x190] sm:$0xff]  }
 0x448   :  { %v538_v15 = vmul.f32 0.125, %v537_v14  ;;  %v1266_v14 = vld [vmem:[#allocation5 + $0x198] sm:$0xff]  }
 0x44a   :  { %v539_v16 = vsub.f32 %v526_v5, %v538_v15  ;;  %v1267_v15 = vld [vmem:[#allocation5 + $0x1a0] sm:$0xff]  }
 0x44c   :  { %v540_v17 = vmul.f32 %v539_v16, %v539_v16 }
 0x44e   :  { %v541_v18 = vrot.slane %v540_v17, 4 }
 0x450   :  { %v542_v19 = vadd.f32 %v541_v18, %v540_v17  ;;  %v1269_v17 = vld [vmem:[#allocation5 + $0x1b0] sm:$0xff]   ;;  %v1270_v18 = vld [vmem:[#allocation5 + $0x1b8] sm:$0xff]  }
 0x452   :  { %v543_v20 = vrot.slane %v542_v19, 2 }
 0x454   :  { %v544_v21 = vadd.f32 %v543_v20, %v542_v19 }
 0x456   :  { %v545_v22 = vrot.slane %v544_v21, 1 }
 0x458   :  { %v546_v23 = vadd.f32 %v545_v22, %v544_v21 }
 0x45a   :  { %v547_v24 = vmul.f32 0.125, %v546_v23 }
 0x45c   :  { %v549_v25 = vadd.f32 1e-05, %v547_v24 }
 0x45e   :  { %1277 = vrsqrt.f32 %v549_v25 }
 0x468   :  { %v1278_v27 = vpop.eup %1277 }
 0x469   :  { %v551_v28 = vmul.f32 %v1278_v27, %v548_v26 }
 0x46b   :  { %v556_v29 = vrot.slane %v551_v28, %v1461_v37 }
 0x46d   :  { %v557_v31 = vmul.f32 %v556_v29, %v539_v16  ;;  %v1268_v16 = vld [vmem:[#allocation5 + $0x1a8] sm:$0xff]  }
 0x46f   :  { %v562_v32 = vadd.f32 %v998_v30, %v557_v31 }
 0x471   :  { %v563_v33 = vmax.f32 %v562_v32, 0.0 }
 0x473   :  { %v564_v34 = vpack.c.bf16 %v563_v33, %v563_v33 }
 0x475   :  { %1168 = vmatmul.mubr.bf16.vlgmr.msra.gmra.mrb[8].mxu0 %v564_v34 }
 0x476   :  { %1207 = vmatprep.mubr.msk.bf16.mxu0 %vm1385_vm0, %v1384_v0  ;;  %1192 = vmatpush3.bf16.msra.mxu0 %v1263_v11 }
 0x477   :  { %1193 = vmatprep.subr.bf16.mxu0 %v1384_v0 }
 0x47a   :  { %1194 = vmatpush3.bf16.msra.mxu0 %v1264_v12 }
 0x47b   :  { %1195 = vmatprep.subr.bf16.mxu0 %v1384_v0 }
 0x47e   :  { %1196 = vmatpush3.bf16.msra.mxu0 %v1265_v13 }
 0x47f   :  { %1197 = vmatprep.subr.bf16.mxu0 %v1384_v0 }
 0x482   :  { %1198 = vmatpush3.bf16.msra.mxu0 %v1266_v14 }
 0x483   :  { %1199 = vmatprep.subr.bf16.mxu0 %v1384_v0 }
 0x486   :  { %1200 = vmatpush3.bf16.msra.mxu0 %v1267_v15 }
 0x487   :  { %1201 = vmatprep.subr.bf16.mxu0 %v1384_v0 }
 0x48a   :  { %1202 = vmatpush3.bf16.msra.mxu0 %v1268_v16 }
 0x48b   :  { %1203 = vmatprep.subr.bf16.mxu0 %v1384_v0 }
 0x48e   :  { %1204 = vmatpush3.bf16.msra.mxu0 %v1269_v17 }
 0x48f   :  { %1205 = vmatprep.subr.bf16.mxu0 %v1384_v0 }
 0x492   :  { %1206 = vmatpush3.bf16.msra.mxu0 %v1270_v18 }
 0x548   :  { %v664_v44 = vpop.f32.mrb[8].mxu0 }
 0x549   :  { %v670_v45 = vrot.slane %v664_v44, 4  ;;  %v1169_v46 = vpop.f32.mrb[9].mxu0 }
 0x54a   :  { %v667_v47 = vpop.f32.mrb[10].mxu0 }
 0x54b   :  { %v671_v48 = vadd.f32 %v670_v45, %v664_v44  ;;  %v1170_v49 = vpop.f32.mrb[11].mxu0 }
 0x54c   :  { %v1017_v49 = vld [vmem:[#allocation7 + $0xc] ss:$0 sm:$0xff] }
 0x54d   :  { %v672_v50 = vrot.slane %v671_v48, 2 }
 0x54f   :  { %v673_v51 = vadd.f32 %v672_v50, %v671_v48 }
 0x551   :  { %v674_v52 = vrot.slane %v673_v51, 1 }
 0x553   :  { %v675_v53 = vadd.f32 %v674_v52, %v673_v51 }
 0x555   :  { %v676_v54 = vmul.f32 0.125, %v675_v53 }
 0x557   :  { %v677_v55 = vsub.f32 %v664_v44, %v676_v54  ;;  %v1016_v44 = vld [vmem:[#allocation7 + $0xb] ss:$0 sm:$0xff] }
 0x559   :  { %v678_v56 = vmul.f32 %v677_v55, %v677_v55 }
 0x55b   :  { %v679_v57 = vrot.slane %v678_v56, 4 }
 0x55d   :  { %v680_v58 = vadd.f32 %v679_v57, %v678_v56 }
 0x55f   :  { %v681_v59 = vrot.slane %v680_v58, 2 }
 0x561   :  { %v682_v60 = vadd.f32 %v681_v59, %v680_v58 }
 0x563   :  { %v683_v61 = vrot.slane %v682_v60, 1 }
 0x565   :  { %v684_v62 = vadd.f32 %v683_v61, %v682_v60 }
 0x567   :  { %v685_v63 = vmul.f32 0.125, %v684_v62 }
 0x569   :  { %v687_v1 = vadd.f32 1e-05, %v685_v63 }
 0x56b   :  { %1279 = vrsqrt.f32 %v687_v1 }
 0x575   :  { %v1280_v3 = vpop.eup %1279 }
 0x576   :  { %v689_v4 = vmul.f32 %v1280_v3, %v686_v2 }
 0x578   :  { %v694_v5 = vrot.slane %v689_v4, %v1461_v37 }
 0x57a   :  { %v695_v7 = vmul.f32 %v694_v5, %v677_v55 }
 0x57c   :  { %v700_v8 = vadd.f32 %v1007_v6, %v695_v7 }
 0x57e   :  { %v701_v9 = vmax.f32 %v700_v8, 0.0 }
 0x580   :  { %v702_v10 = vpack.c.bf16 %v701_v9, %v701_v9 }
 0x582   :  { %1188 = vmatmul.mubr.bf16.vlgmr.msra.gmra.mrb[8].mxu1 %v702_v10 }
 0x655   :  { %v802_v19 = vpop.f32.mrb[8].mxu1 }
 0x656   :  { %v808_v20 = vrot.slane %v802_v19, 4  ;;  %v1189_v21 = vpop.f32.mrb[9].mxu1 }
 0x657   :  { %v805_v22 = vpop.f32.mrb[10].mxu1 }
 0x658   :  { %v809_v23 = vadd.f32 %v808_v20, %v802_v19  ;;  %v1190_v24 = vpop.f32.mrb[11].mxu1 }
 0x65a   :  { %v810_v25 = vrot.slane %v809_v23, 2 }
 0x65c   :  { %v811_v26 = vadd.f32 %v810_v25, %v809_v23 }
 0x65e   :  { %v812_v27 = vrot.slane %v811_v26, 1 }
 0x660   :  { %v813_v28 = vadd.f32 %v812_v27, %v811_v26 }
 0x662   :  { %v814_v29 = vmul.f32 0.125, %v813_v28 }
 0x664   :  { %v815_v30 = vsub.f32 %v802_v19, %v814_v29 }
 0x666   :  { %v816_v31 = vmul.f32 %v815_v30, %v815_v30 }
 0x668   :  { %v817_v32 = vrot.slane %v816_v31, 4 }
 0x66a   :  { %v818_v33 = vadd.f32 %v817_v32, %v816_v31 }
 0x66c   :  { %v819_v34 = vrot.slane %v818_v33, 2 }
 0x66e   :  { %v820_v35 = vadd.f32 %v819_v34, %v818_v33 }
 0x670   :  { %v821_v0 = vrot.slane %v820_v35, 1 }
 0x672   :  { %v822_v36 = vadd.f32 %v821_v0, %v820_v35 }
 0x674   :  { %v823_v38 = vmul.f32 0.125, %v822_v36 }
 0x676   :  { %v825_v39 = vadd.f32 1e-05, %v823_v38 }
 0x678   :  { %1281 = vrsqrt.f32 %v825_v39 }
 0x682   :  { %v1282_v41 = vpop.eup %1281 }
 0x683   :  { %v827_v42 = vmul.f32 %v1282_v41, %v824_v40 }
 0x685   :  { %v832_v43 = vrot.slane %v827_v42, %v1461_v37 }
 0x687   :  { %v833_v45 = vmul.f32 %v832_v43, %v815_v30 }
 0x689   :  { %v838_v46 = vadd.f32 %v1016_v44, %v833_v45 }
 0x68b   :  { %v839_v47 = vmax.f32 %v838_v46, 0.0 }
 0x68d   :  { %v840_v48 = vpack.c.bf16 %v839_v47, %v839_v47 }
 0x68f   :  { %1208 = vmatmul.mubr.bf16.vlgmr.msra.gmra.mrb[12].mxu0 %v840_v48 }
 0x762   :  { %v945_v50 = vpop.f32.mrb[12].mxu0 }
 0x763   :  { %v946_v51 = vadd.f32 %v1017_v49, %v945_v50  ;;  %v1209_v52 = vpop.f32.mrb[13].mxu0 }
 0x764   :  { %v948_v53 = vpop.f32.mrb[14].mxu0 }
 0x765   :  { %951 = vst [vmem:[#allocation8] sm:$0xff] %v946_v51  ;;  %v1210_v54 = vpop.f32.mrb[15].mxu0 }
 0x766   :  { %1360 = shalt.err (!%p1357_p0)
}
 0x767   :  { %s1361_s27 = scalar_lea.hbm %s1530_s3, 128 }
 0x768   :  { %p1362_p1 = scmp.ne.s32.totalorder %s1530_s3, %s1361_s27  ;;  %p1365_p2 = scmp.lt.u32.totalorder %s1361_s27, %s1530_s3 }
 0x76a   :  { %p1367_p3 = pnand %p1365_p2, %p1362_p1 }
 0x76c   :  { %1370 = shalt.err (!%p1367_p3)
}
 0x76d   :  { %961 = dma.vmem_to_hbm [thread:$0]  %s959_s23, 128, %s1530_s3, [#allocation4]  }
 0x76e   :  { %1375 = dma.done.wait [#allocation4], 128  }
 0x76f   :  { %1376 = vsyncadd [#allocation4], 4294967168 }
 0x770   :  { %965 = vsyncpa [#allocation3], 1 }
 0x771   :  { %966 = vsyncpa [#allocation6], 1 }
 0x772   :  { %967 = vsyncpa [#allocation4], 1 }

</bundles_post_ra>
